<compile_context>
chip_gen: v5e
topology: v5e:2x2
jax: 0.10.0
libtpu: 0.0.40
codegen_flags: <defaults>
</compile_context>

<pallas_src>
import functools

import jax
import jax.numpy as jnp
from jax import lax
from jax.experimental import pallas as pl
from jax.experimental.pallas import tpu as pltpu

EPS = 1e-5
_VMEM_LIMIT = 32 * 1024 * 1024


# ------------------------------------------------------------------
# Weight packing: (3,3,Cin,Cout) HWIO -> (3, W*Cin, W*Cout) banded matrices
# so that  conv3x3(x)[h] == sum_kh xpad[h+kh] @ B[kh]
# with xpad the row-zero-padded, (w,c)-packed activation (lane = w*C + c).
# The band also encodes the zero-padding along W.
# ------------------------------------------------------------------
def _pack_conv_weights(w_hwio, W):
    _, _, Cin, Cout = w_hwio.shape
    mats = []
    for kh in range(3):
        m = jnp.zeros((W, Cin, W, Cout), jnp.float32)
        for kw in range(3):
            band = jnp.eye(W, k=1 - kw, dtype=jnp.float32)  # [w_src, w_dst]
            m = m + jnp.einsum("sd,io->sido", band, w_hwio[kh, kw])
        mats.append(m.reshape(W * Cin, W * Cout))
    return jnp.stack(mats)  # (3, W*Cin, W*Cout)


# ------------------------------------------------------------------
# Kernel 1/2: [optional bn+relu on input] + 3x3 conv + BN stat partials.
# One image per grid step; everything lane-dense on the W*C axis.
# ------------------------------------------------------------------
def _fused_conv3x3_kernel(x_ref, sc_ref, sh_ref, b_ref, y_ref, s_ref, sq_ref,
                          xp_ref, *, H, L, fuse_affine_relu, matmul_dtype):
    x = x_ref[0]                                            # (H, L) f32
    if fuse_affine_relu:
        # previous BN's affine + ReLU fused into this conv's input path
        x = jnp.maximum(x * sc_ref[...] + sh_ref[...], 0.0)

    # 1-row halo handled in VMEM (no HBM-side jnp.pad copy).
    zero_row = jnp.zeros((1, L), xp_ref.dtype)
    xp_ref[0:1, :] = zero_row
    xp_ref[H + 1:H + 2, :] = zero_row
    xp_ref[1:H + 1, :] = x

    acc = jnp.zeros((H, L), jnp.float32)
    for kh in range(3):                                     # 3 MXU pushes, K=L
        acc = acc + jnp.dot(
            xp_ref[kh:kh + H, :].astype(matmul_dtype),
            b_ref[kh],
            preferred_element_type=jnp.float32)

    y_ref[0] = acc
    # BN batch-stat partials on the f32 accumulator (per-(w,c) lane sums);
    # folded to per-channel in XLA — the conv output is never re-read.
    s_ref[0] = jnp.sum(acc, axis=0, keepdims=True)
    sq_ref[0] = jnp.sum(acc * acc, axis=0, keepdims=True)


def fused_conv3x3(x_packed, b_mats, scale_l, shift_l, *, fuse_affine_relu,
                  matmul_dtype):
    N, H, L = x_packed.shape
    kern = functools.partial(_fused_conv3x3_kernel, H=H, L=L,
                             fuse_affine_relu=fuse_affine_relu,
                             matmul_dtype=matmul_dtype)
    return pl.pallas_call(
        kern,
        out_shape=(jax.ShapeDtypeStruct((N, H, L), jnp.float32),
                   jax.ShapeDtypeStruct((N, 1, L), jnp.float32),
                   jax.ShapeDtypeStruct((N, 1, L), jnp.float32)),
        grid=(N,),
        in_specs=[
            pl.BlockSpec((1, H, L), lambda n: (n, 0, 0)),
            pl.BlockSpec((1, L), lambda n: (0, 0)),
            pl.BlockSpec((1, L), lambda n: (0, 0)),
            pl.BlockSpec((3, L, L), lambda n: (0, 0, 0)),
        ],
        out_specs=(pl.BlockSpec((1, H, L), lambda n: (n, 0, 0)),
                   pl.BlockSpec((1, 1, L), lambda n: (n, 0, 0)),
                   pl.BlockSpec((1, 1, L), lambda n: (n, 0, 0))),
        scratch_shapes=[pltpu.VMEM((H + 2, L), jnp.float32)],
        compiler_params=pltpu.CompilerParams(
            dimension_semantics=("parallel",),
            vmem_limit_bytes=_VMEM_LIMIT),
    )(x_packed, scale_l, shift_l, b_mats)


# ------------------------------------------------------------------
# Kernel 3: bn2 affine + residual add + relu (lane-dense elementwise)
# ------------------------------------------------------------------
def _bn_add_relu_kernel(y_ref, idn_ref, sc_ref, sh_ref, o_ref):
    o_ref[...] = jnp.maximum(
        y_ref[...] * sc_ref[...] + sh_ref[...] + idn_ref[...], 0.0)


def _pick_row_tile(M, cap=1024):
    for t in (cap, 512, 256, 128, 64, 32, 16, 8):
        if t <= M and M % t == 0:
            return t
    return M  # small / irregular M: single full block (M*L*4 << VMEM here)


def bn_add_relu(y_flat, idn_flat, scale_l, shift_l):
    M, L = y_flat.shape
    TM = _pick_row_tile(M)
    return pl.pallas_call(
        _bn_add_relu_kernel,
        out_shape=jax.ShapeDtypeStruct((M, L), jnp.float32),
        grid=(M // TM,),
        in_specs=[pl.BlockSpec((TM, L), lambda i: (i, 0)),
                  pl.BlockSpec((TM, L), lambda i: (i, 0)),
                  pl.BlockSpec((1, L), lambda i: (0, 0)),
                  pl.BlockSpec((1, L), lambda i: (0, 0))],
        out_specs=pl.BlockSpec((TM, L), lambda i: (i, 0)),
        compiler_params=pltpu.CompilerParams(
            dimension_semantics=("parallel",),
            vmem_limit_bytes=_VMEM_LIMIT),
    )(y_flat, idn_flat, scale_l, shift_l)


# ------------------------------------------------------------------
# XLA-side fold of the per-image stat partials -> packed BN affine vectors
# ------------------------------------------------------------------
def _bn_affine_packed(s_partial, sq_partial, count, gamma, beta, W, C):
    s_c = s_partial.sum(axis=(0, 1)).reshape(W, C).sum(axis=0)
    sq_c = sq_partial.sum(axis=(0, 1)).reshape(W, C).sum(axis=0)
    mean = s_c / count
    # TODO(synk): E[x^2]-E[x]^2 is adequate at these scales; use a shifted
    # two-pass variance if activations ever have large per-channel means.
    var = sq_c / count - mean * mean
    scale = gamma / jnp.sqrt(var + EPS)
    shift = beta - mean * scale
    L = W * C
    return (jnp.tile(scale, W).reshape(1, L).astype(jnp.float32),
            jnp.tile(shift, W).reshape(1, L).astype(jnp.float32))


# ------------------------------------------------------------------
# Full BasicBlock2d forward (stride=1, no downsample)
# ------------------------------------------------------------------
@functools.partial(jax.jit, static_argnames=("matmul_dtype",))
def basic_block2d_forward(x_nchw, params, matmul_dtype=jnp.bfloat16):
    N, C, H, W = x_nchw.shape
    assert params["w1"].shape[-1] == C and params["w2"].shape[-1] == C, (
        "residual add without a downsample module requires inplanes == planes")
    # TODO(synk): stride>1 / downsample path not implemented (needs a strided
    # band matrix + a downsample conv/BN kernel).

    L = W * C
    count = float(N * H * W)

    # NCHW -> packed (N, H, W*C): W and C ride the 128-lane axis together
    # (lane-dense when W*C is a multiple of 128; here 16*8 = 128 exactly).
    x_packed = jnp.transpose(x_nchw, (0, 2, 3, 1)).reshape(N, H, L)
    x_packed = x_packed.astype(jnp.float32)

    # Banded (W*Cin, W*Cout) weight matrices, shipped in the MXU operand dtype.
    b1 = _pack_conv_weights(params["w1"], W).astype(matmul_dtype)
    b2 = _pack_conv_weights(params["w2"], W).astype(matmul_dtype)

    ones_l = jnp.ones((1, L), jnp.float32)
    zeros_l = jnp.zeros((1, L), jnp.float32)

    # conv1 (+ fused BN1 batch-stat partials).  Conv bias omitted: it cancels
    # exactly under training-mode BN.
    y1, s1, sq1 = fused_conv3x3(x_packed, b1, ones_l, zeros_l,
                                fuse_affine_relu=False,
                                matmul_dtype=matmul_dtype)
    sc1, sh1 = _bn_affine_packed(s1, sq1, count,
                                 params["g1"], params["be1"], W, C)

    # bn1 + relu fused into conv2's input + conv2 (+ BN2 stat partials); the
    # intermediate z never touches HBM.
    y2, s2, sq2 = fused_conv3x3(y1, b2, sc1, sh1,
                                fuse_affine_relu=True,
                                matmul_dtype=matmul_dtype)
    sc2, sh2 = _bn_affine_packed(s2, sq2, count,
                                 params["g2"], params["be2"], W, C)

    # bn2 + residual add + relu, lane-dense big tiles.
    out_flat = bn_add_relu(y2.reshape(N * H, L),
                           x_packed.reshape(N * H, L), sc2, sh2)
    out = out_flat.reshape(N, H, W, C)
    return jnp.transpose(out, (0, 3, 1, 2))  # back to NCHW


# ------------------------------------------------------------------
# Pure-JAX reference (true module semantics, f32, with conv bias)
# ------------------------------------------------------------------
def reference_forward(x_nchw, params):
    x = jnp.transpose(x_nchw, (0, 2, 3, 1)).astype(jnp.float32)

    def conv(y, w, b):
        return lax.conv_general_dilated(
            y, w, window_strides=(1, 1), padding=((1, 1), (1, 1)),
            dimension_numbers=("NHWC", "HWIO", "NHWC")) + b

    def bn(y, gamma, beta):
        mean = y.mean(axis=(0, 1, 2))
        var = y.var(axis=(0, 1, 2))
        return (y - mean) / jnp.sqrt(var + EPS) * gamma + beta

    out = jax.nn.relu(bn(conv(x, params["w1"], params["b1"]),
                         params["g1"], params["be1"]))
    out = bn(conv(out, params["w2"], params["b2"]),
             params["g2"], params["be2"])
    out = jax.nn.relu(out + x)
    return jnp.transpose(out, (0, 3, 1, 2))


if __name__ == "__main__":
    N, C, H, W = 2, 8, 16, 16          # W*C = 128 -> exactly lane-dense
    key = jax.random.PRNGKey(0)
    ks = jax.random.split(key, 7)

    x = jax.random.normal(ks[0], (N, C, H, W), jnp.float32)
    params = dict(
        w1=0.1 * jax.random.normal(ks[1], (3, 3, C, C), jnp.float32),
        b1=0.1 * jax.random.normal(ks[2], (C,), jnp.float32),
        w2=0.1 * jax.random.normal(ks[3], (3, 3, C, C), jnp.float32),
        b2=0.1 * jax.random.normal(ks[4], (C,), jnp.float32),
        g1=1.0 + 0.1 * jax.random.normal(ks[5], (C,), jnp.float32),
        be1=0.1 * jax.random.normal(ks[6], (C,), jnp.float32),
        g2=jnp.ones((C,), jnp.float32),
        be2=jnp.zeros((C,), jnp.float32),
    )

    ref = jax.block_until_ready(reference_forward(x, params))

    # bf16 MXU-operand path (the performance configuration).
    out = jax.block_until_ready(basic_block2d_forward(x, params))
    assert out.shape == (N, C, H, W), out.shape
    assert jnp.allclose(out, ref, rtol=5e-2, atol=5e-2), (
        float(jnp.max(jnp.abs(out - ref))))   # bf16 quantization noise only

    # Strict check of the kernel logic with f32 matmul operands.
    out_f32 = jax.block_until_ready(
        basic_block2d_forward(x, params, matmul_dtype=jnp.float32))
    assert jnp.allclose(out_f32, ref, rtol=1e-3, atol=1e-3), (
        float(jnp.max(jnp.abs(out_f32 - ref))))

    print("KERNEL_OK")
</pallas_src>

<mosaic_0001>
module attributes {stable_mosaic.version = 11 : i64} {
  func.func @_fused_conv3x3_kernel(%arg0: i32, %arg1: memref<1x16x128xf32, #tpu.memory_space<vmem>>, %arg2: memref<1x128xf32, #tpu.memory_space<vmem>>, %arg3: memref<1x128xf32, #tpu.memory_space<vmem>>, %arg4: memref<3x128x128xbf16, #tpu.memory_space<vmem>>, %arg5: memref<1x16x128xf32, #tpu.memory_space<vmem>>, %arg6: memref<1x1x128xf32, #tpu.memory_space<vmem>>, %arg7: memref<1x1x128xf32, #tpu.memory_space<vmem>>, %arg8: memref<18x128xf32, #tpu.memory_space<vmem>>) attributes {dimension_semantics = [#tpu.dimension_semantics<parallel>], iteration_bounds = array<i64: 2>, scalar_prefetch = 0 : i64, scratch_operands = 1 : i64, tpu.core_type = #tpu.core_type<tc>, window_params = [{transform_indices = @transform_0, window_bounds = array<i64: 1, 16, 128>}, {pipeline_mode = #tpu.pipeline_mode<synchronous>, transform_indices = @transform_1, window_bounds = array<i64: 1, 128>}, {pipeline_mode = #tpu.pipeline_mode<synchronous>, transform_indices = @transform_2, window_bounds = array<i64: 1, 128>}, {pipeline_mode = #tpu.pipeline_mode<synchronous>, transform_indices = @transform_3, window_bounds = array<i64: 3, 128, 128>}, {transform_indices = @transform_4, window_bounds = array<i64: 1, 16, 128>}, {transform_indices = @transform_5, window_bounds = array<i64: 1, 1, 128>}, {transform_indices = @transform_6, window_bounds = array<i64: 1, 1, 128>}]} {
    %c0 = arith.constant 0 : index
    %c0_0 = arith.constant 0 : index
    %c0_1 = arith.constant 0 : index
    %0 = vector.load %arg1[%c0, %c0_0, %c0_1] : memref<1x16x128xf32, #tpu.memory_space<vmem>>, vector<1x16x128xf32>
    %1 = vector.shape_cast %0 : vector<1x16x128xf32> to vector<16x128xf32>
    %cst = arith.constant 0.000000e+00 : f32
    %2 = vector.broadcast %cst : f32 to vector<1x128xf32>
    %c0_2 = arith.constant 0 : index
    %c0_3 = arith.constant 0 : index
    %3 = vector.load %arg8[%c0_2, %c0_3] : memref<18x128xf32, #tpu.memory_space<vmem>>, vector<1x128xf32>
    tpu.vector_store %arg8[%c0_2, %c0_3], %2 {strides = array<i32>} : memref<18x128xf32, #tpu.memory_space<vmem>>, vector<1x128xf32>,
    %c17 = arith.constant 17 : index
    %c0_4 = arith.constant 0 : index
    %4 = vector.load %arg8[%c17, %c0_4] : memref<18x128xf32, #tpu.memory_space<vmem>>, vector<1x128xf32>
    tpu.vector_store %arg8[%c17, %c0_4], %2 {strides = array<i32>} : memref<18x128xf32, #tpu.memory_space<vmem>>, vector<1x128xf32>,
    %c1 = arith.constant 1 : index
    %c0_5 = arith.constant 0 : index
    %5 = vector.load %arg8[%c1, %c0_5] : memref<18x128xf32, #tpu.memory_space<vmem>>, vector<16x128xf32>
    tpu.vector_store %arg8[%c1, %c0_5], %1 {strides = array<i32>} : memref<18x128xf32, #tpu.memory_space<vmem>>, vector<16x128xf32>,
    %cst_6 = arith.constant 0.000000e+00 : f32
    %6 = vector.broadcast %cst_6 : f32 to vector<16x128xf32>
    %c0_7 = arith.constant 0 : index
    %c0_8 = arith.constant 0 : index
    %7 = vector.load %arg8[%c0_7, %c0_8] : memref<18x128xf32, #tpu.memory_space<vmem>>, vector<16x128xf32>
    %8 = arith.truncf %7 : vector<16x128xf32> to vector<16x128xbf16>
    %c0_9 = arith.constant 0 : index
    %c0_10 = arith.constant 0 : index
    %c0_11 = arith.constant 0 : index
    %9 = vector.load %arg4[%c0_9, %c0_10, %c0_11] : memref<3x128x128xbf16, #tpu.memory_space<vmem>>, vector<1x128x128xbf16>
    %10 = vector.shape_cast %9 : vector<1x128x128xbf16> to vector<128x128xbf16>
    %cst_12 = arith.constant dense<0.000000e+00> : vector<16x128xf32>
    %11 = tpu.matmul %8, %10, %cst_12 {dimension_numbers = #tpu.dot_dimension_numbers<[1], [0], [0], [1], [0, 0, 1, 1], [], []>} : vector<16x128xbf16>, vector<128x128xbf16>, vector<16x128xf32> -> vector<16x128xf32>
    %12 = arith.addf %6, %11 : vector<16x128xf32>
    %c1_13 = arith.constant 1 : index
    %c0_14 = arith.constant 0 : index
    %13 = vector.load %arg8[%c1_13, %c0_14] : memref<18x128xf32, #tpu.memory_space<vmem>>, vector<16x128xf32>
    %14 = arith.truncf %13 : vector<16x128xf32> to vector<16x128xbf16>
    %c1_15 = arith.constant 1 : index
    %c0_16 = arith.constant 0 : index
    %c0_17 = arith.constant 0 : index
    %15 = vector.load %arg4[%c1_15, %c0_16, %c0_17] : memref<3x128x128xbf16, #tpu.memory_space<vmem>>, vector<1x128x128xbf16>
    %16 = vector.shape_cast %15 : vector<1x128x128xbf16> to vector<128x128xbf16>
    %cst_18 = arith.constant dense<0.000000e+00> : vector<16x128xf32>
    %17 = tpu.matmul %14, %16, %cst_18 {dimension_numbers = #tpu.dot_dimension_numbers<[1], [0], [0], [1], [0, 0, 1, 1], [], []>} : vector<16x128xbf16>, vector<128x128xbf16>, vector<16x128xf32> -> vector<16x128xf32>
    %18 = arith.addf %12, %17 : vector<16x128xf32>
    %c2 = arith.constant 2 : index
    %c0_19 = arith.constant 0 : index
    %19 = vector.load %arg8[%c2, %c0_19] : memref<18x128xf32, #tpu.memory_space<vmem>>, vector<16x128xf32>
    %20 = arith.truncf %19 : vector<16x128xf32> to vector<16x128xbf16>
    %c2_20 = arith.constant 2 : index
    %c0_21 = arith.constant 0 : index
    %c0_22 = arith.constant 0 : index
    %21 = vector.load %arg4[%c2_20, %c0_21, %c0_22] : memref<3x128x128xbf16, #tpu.memory_space<vmem>>, vector<1x128x128xbf16>
    %22 = vector.shape_cast %21 : vector<1x128x128xbf16> to vector<128x128xbf16>
    %cst_23 = arith.constant dense<0.000000e+00> : vector<16x128xf32>
    %23 = tpu.matmul %20, %22, %cst_23 {dimension_numbers = #tpu.dot_dimension_numbers<[1], [0], [0], [1], [0, 0, 1, 1], [], []>} : vector<16x128xbf16>, vector<128x128xbf16>, vector<16x128xf32> -> vector<16x128xf32>
    %24 = arith.addf %18, %23 : vector<16x128xf32>
    %c0_24 = arith.constant 0 : index
    %c0_25 = arith.constant 0 : index
    %c0_26 = arith.constant 0 : index
    %25 = vector.load %arg5[%c0_24, %c0_25, %c0_26] : memref<1x16x128xf32, #tpu.memory_space<vmem>>, vector<1x16x128xf32>
    %26 = vector.shape_cast %25 : vector<1x16x128xf32> to vector<16x128xf32>
    %27 = vector.shape_cast %24 : vector<16x128xf32> to vector<1x16x128xf32>
    tpu.vector_store %arg5[%c0_24, %c0_25, %c0_26], %27 {strides = array<i32>} : memref<1x16x128xf32, #tpu.memory_space<vmem>>, vector<1x16x128xf32>,
    %cst_27 = arith.constant dense<0.000000e+00> : vector<128xf32>
    %28 = vector.multi_reduction <add>, %24, %cst_27 [0] : vector<16x128xf32> to vector<128xf32>
    %29 = vector.shape_cast %28 : vector<128xf32> to vector<1x128xf32>
    %c0_28 = arith.constant 0 : index
    %c0_29 = arith.constant 0 : index
    %c0_30 = arith.constant 0 : index
    %30 = vector.load %arg6[%c0_28, %c0_29, %c0_30] : memref<1x1x128xf32, #tpu.memory_space<vmem>>, vector<1x1x128xf32>
    %31 = vector.shape_cast %30 : vector<1x1x128xf32> to vector<1x128xf32>
    %32 = vector.shape_cast %29 : vector<1x128xf32> to vector<1x1x128xf32>
    tpu.vector_store %arg6[%c0_28, %c0_29, %c0_30], %32 {strides = array<i32>} : memref<1x1x128xf32, #tpu.memory_space<vmem>>, vector<1x1x128xf32>,
    %33 = arith.mulf %24, %24 : vector<16x128xf32>
    %cst_31 = arith.constant dense<0.000000e+00> : vector<128xf32>
    %34 = vector.multi_reduction <add>, %33, %cst_31 [0] : vector<16x128xf32> to vector<128xf32>
    %35 = vector.shape_cast %34 : vector<128xf32> to vector<1x128xf32>
    %c0_32 = arith.constant 0 : index
    %c0_33 = arith.constant 0 : index
    %c0_34 = arith.constant 0 : index
    %36 = vector.load %arg7[%c0_32, %c0_33, %c0_34] : memref<1x1x128xf32, #tpu.memory_space<vmem>>, vector<1x1x128xf32>
    %37 = vector.shape_cast %36 : vector<1x1x128xf32> to vector<1x128xf32>
    %38 = vector.shape_cast %35 : vector<1x128xf32> to vector<1x1x128xf32>
    tpu.vector_store %arg7[%c0_32, %c0_33, %c0_34], %38 {strides = array<i32>} : memref<1x1x128xf32, #tpu.memory_space<vmem>>, vector<1x1x128xf32>,
    return
  }
  func.func @transform_0(%arg0: i32) -> (i32, i32, i32) {
    %c0_i32 = arith.constant 0 : i32
    %c0_i32_0 = arith.constant 0 : i32
    %c0_i32_1 = arith.constant 0 : i32
    return %arg0, %c0_i32, %c0_i32_0 : i32, i32, i32
  }
  func.func @transform_1(%arg0: i32) -> (i32, i32) {
    %c0_i32 = arith.constant 0 : i32
    %c0_i32_0 = arith.constant 0 : i32
    %c0_i32_1 = arith.constant 0 : i32
    return %c0_i32, %c0_i32_0 : i32, i32
  }
  func.func @transform_2(%arg0: i32) -> (i32, i32) {
    %c0_i32 = arith.constant 0 : i32
    %c0_i32_0 = arith.constant 0 : i32
    %c0_i32_1 = arith.constant 0 : i32
    return %c0_i32, %c0_i32_0 : i32, i32
  }
  func.func @transform_3(%arg0: i32) -> (i32, i32, i32) {
    %c0_i32 = arith.constant 0 : i32
    %c0_i32_0 = arith.constant 0 : i32
    %c0_i32_1 = arith.constant 0 : i32
    %c0_i32_2 = arith.constant 0 : i32
    return %c0_i32, %c0_i32_0, %c0_i32_1 : i32, i32, i32
  }
  func.func @transform_4(%arg0: i32) -> (i32, i32, i32) {
    %c0_i32 = arith.constant 0 : i32
    %c0_i32_0 = arith.constant 0 : i32
    %c0_i32_1 = arith.constant 0 : i32
    return %arg0, %c0_i32, %c0_i32_0 : i32, i32, i32
  }
  func.func @transform_5(%arg0: i32) -> (i32, i32, i32) {
    %c0_i32 = arith.constant 0 : i32
    %c0_i32_0 = arith.constant 0 : i32
    %c0_i32_1 = arith.constant 0 : i32
    return %arg0, %c0_i32, %c0_i32_0 : i32, i32, i32
  }
  func.func @transform_6(%arg0: i32) -> (i32, i32, i32) {
    %c0_i32 = arith.constant 0 : i32
    %c0_i32_0 = arith.constant 0 : i32
    %c0_i32_1 = arith.constant 0 : i32
    return %arg0, %c0_i32, %c0_i32_0 : i32, i32, i32
  }
}

module attributes {stable_mosaic.version = 11 : i64} {
  func.func @_fused_conv3x3_kernel(%arg0: i32, %arg1: memref<1x16x128xf32, #tpu.memory_space<vmem>>, %arg2: memref<1x128xf32, #tpu.memory_space<vmem>>, %arg3: memref<1x128xf32, #tpu.memory_space<vmem>>, %arg4: memref<3x128x128xbf16, #tpu.memory_space<vmem>>, %arg5: memref<1x16x128xf32, #tpu.memory_space<vmem>>, %arg6: memref<1x1x128xf32, #tpu.memory_space<vmem>>, %arg7: memref<1x1x128xf32, #tpu.memory_space<vmem>>, %arg8: memref<18x128xf32, #tpu.memory_space<vmem>>) attributes {dimension_semantics = [#tpu.dimension_semantics<parallel>], iteration_bounds = array<i64: 2>, scalar_prefetch = 0 : i64, scratch_operands = 1 : i64, tpu.core_type = #tpu.core_type<tc>, window_params = [{transform_indices = @transform_0, window_bounds = array<i64: 1, 16, 128>}, {pipeline_mode = #tpu.pipeline_mode<synchronous>, transform_indices = @transform_1, window_bounds = array<i64: 1, 128>}, {pipeline_mode = #tpu.pipeline_mode<synchronous>, transform_indices = @transform_2, window_bounds = array<i64: 1, 128>}, {pipeline_mode = #tpu.pipeline_mode<synchronous>, transform_indices = @transform_3, window_bounds = array<i64: 3, 128, 128>}, {transform_indices = @transform_4, window_bounds = array<i64: 1, 16, 128>}, {transform_indices = @transform_5, window_bounds = array<i64: 1, 1, 128>}, {transform_indices = @transform_6, window_bounds = array<i64: 1, 1, 128>}]} {
    %c0 = arith.constant 0 : index
    %c0_0 = arith.constant 0 : index
    %c0_1 = arith.constant 0 : index
    %0 = vector.load %arg1[%c0, %c0_0, %c0_1] : memref<1x16x128xf32, #tpu.memory_space<vmem>>, vector<1x16x128xf32>
    %1 = vector.shape_cast %0 : vector<1x16x128xf32> to vector<16x128xf32>
    %c0_2 = arith.constant 0 : index
    %c0_3 = arith.constant 0 : index
    %2 = vector.load %arg2[%c0_2, %c0_3] : memref<1x128xf32, #tpu.memory_space<vmem>>, vector<1x128xf32>
    %3 = vector.broadcast %2 : vector<1x128xf32> to vector<16x128xf32>
    %4 = arith.mulf %1, %3 : vector<16x128xf32>
    %c0_4 = arith.constant 0 : index
    %c0_5 = arith.constant 0 : index
    %5 = vector.load %arg3[%c0_4, %c0_5] : memref<1x128xf32, #tpu.memory_space<vmem>>, vector<1x128xf32>
    %6 = vector.broadcast %5 : vector<1x128xf32> to vector<16x128xf32>
    %7 = arith.addf %4, %6 : vector<16x128xf32>
    %cst = arith.constant 0.000000e+00 : f32
    %8 = vector.broadcast %cst : f32 to vector<16x128xf32>
    %9 = arith.maximumf %7, %8 : vector<16x128xf32>
    %cst_6 = arith.constant 0.000000e+00 : f32
    %10 = vector.broadcast %cst_6 : f32 to vector<1x128xf32>
    %c0_7 = arith.constant 0 : index
    %c0_8 = arith.constant 0 : index
    %11 = vector.load %arg8[%c0_7, %c0_8] : memref<18x128xf32, #tpu.memory_space<vmem>>, vector<1x128xf32>
    tpu.vector_store %arg8[%c0_7, %c0_8], %10 {strides = array<i32>} : memref<18x128xf32, #tpu.memory_space<vmem>>, vector<1x128xf32>,
    %c17 = arith.constant 17 : index
    %c0_9 = arith.constant 0 : index
    %12 = vector.load %arg8[%c17, %c0_9] : memref<18x128xf32, #tpu.memory_space<vmem>>, vector<1x128xf32>
    tpu.vector_store %arg8[%c17, %c0_9], %10 {strides = array<i32>} : memref<18x128xf32, #tpu.memory_space<vmem>>, vector<1x128xf32>,
    %c1 = arith.constant 1 : index
    %c0_10 = arith.constant 0 : index
    %13 = vector.load %arg8[%c1, %c0_10] : memref<18x128xf32, #tpu.memory_space<vmem>>, vector<16x128xf32>
    tpu.vector_store %arg8[%c1, %c0_10], %9 {strides = array<i32>} : memref<18x128xf32, #tpu.memory_space<vmem>>, vector<16x128xf32>,
    %cst_11 = arith.constant 0.000000e+00 : f32
    %14 = vector.broadcast %cst_11 : f32 to vector<16x128xf32>
    %c0_12 = arith.constant 0 : index
    %c0_13 = arith.constant 0 : index
    %15 = vector.load %arg8[%c0_12, %c0_13] : memref<18x128xf32, #tpu.memory_space<vmem>>, vector<16x128xf32>
    %16 = arith.truncf %15 : vector<16x128xf32> to vector<16x128xbf16>
    %c0_14 = arith.constant 0 : index
    %c0_15 = arith.constant 0 : index
    %c0_16 = arith.constant 0 : index
    %17 = vector.load %arg4[%c0_14, %c0_15, %c0_16] : memref<3x128x128xbf16, #tpu.memory_space<vmem>>, vector<1x128x128xbf16>
    %18 = vector.shape_cast %17 : vector<1x128x128xbf16> to vector<128x128xbf16>
    %cst_17 = arith.constant dense<0.000000e+00> : vector<16x128xf32>
    %19 = tpu.matmul %16, %18, %cst_17 {dimension_numbers = #tpu.dot_dimension_numbers<[1], [0], [0], [1], [0, 0, 1, 1], [], []>} : vector<16x128xbf16>, vector<128x128xbf16>, vector<16x128xf32> -> vector<16x128xf32>
    %20 = arith.addf %14, %19 : vector<16x128xf32>
    %c1_18 = arith.constant 1 : index
    %c0_19 = arith.constant 0 : index
    %21 = vector.load %arg8[%c1_18, %c0_19] : memref<18x128xf32, #tpu.memory_space<vmem>>, vector<16x128xf32>
    %22 = arith.truncf %21 : vector<16x128xf32> to vector<16x128xbf16>
    %c1_20 = arith.constant 1 : index
    %c0_21 = arith.constant 0 : index
    %c0_22 = arith.constant 0 : index
    %23 = vector.load %arg4[%c1_20, %c0_21, %c0_22] : memref<3x128x128xbf16, #tpu.memory_space<vmem>>, vector<1x128x128xbf16>
    %24 = vector.shape_cast %23 : vector<1x128x128xbf16> to vector<128x128xbf16>
    %cst_23 = arith.constant dense<0.000000e+00> : vector<16x128xf32>
    %25 = tpu.matmul %22, %24, %cst_23 {dimension_numbers = #tpu.dot_dimension_numbers<[1], [0], [0], [1], [0, 0, 1, 1], [], []>} : vector<16x128xbf16>, vector<128x128xbf16>, vector<16x128xf32> -> vector<16x128xf32>
    %26 = arith.addf %20, %25 : vector<16x128xf32>
    %c2 = arith.constant 2 : index
    %c0_24 = arith.constant 0 : index
    %27 = vector.load %arg8[%c2, %c0_24] : memref<18x128xf32, #tpu.memory_space<vmem>>, vector<16x128xf32>
    %28 = arith.truncf %27 : vector<16x128xf32> to vector<16x128xbf16>
    %c2_25 = arith.constant 2 : index
    %c0_26 = arith.constant 0 : index
    %c0_27 = arith.constant 0 : index
    %29 = vector.load %arg4[%c2_25, %c0_26, %c0_27] : memref<3x128x128xbf16, #tpu.memory_space<vmem>>, vector<1x128x128xbf16>
    %30 = vector.shape_cast %29 : vector<1x128x128xbf16> to vector<128x128xbf16>
    %cst_28 = arith.constant dense<0.000000e+00> : vector<16x128xf32>
    %31 = tpu.matmul %28, %30, %cst_28 {dimension_numbers = #tpu.dot_dimension_numbers<[1], [0], [0], [1], [0, 0, 1, 1], [], []>} : vector<16x128xbf16>, vector<128x128xbf16>, vector<16x128xf32> -> vector<16x128xf32>
    %32 = arith.addf %26, %31 : vector<16x128xf32>
    %c0_29 = arith.constant 0 : index
    %c0_30 = arith.constant 0 : index
    %c0_31 = arith.constant 0 : index
    %33 = vector.load %arg5[%c0_29, %c0_30, %c0_31] : memref<1x16x128xf32, #tpu.memory_space<vmem>>, vector<1x16x128xf32>
    %34 = vector.shape_cast %33 : vector<1x16x128xf32> to vector<16x128xf32>
    %35 = vector.shape_cast %32 : vector<16x128xf32> to vector<1x16x128xf32>
    tpu.vector_store %arg5[%c0_29, %c0_30, %c0_31], %35 {strides = array<i32>} : memref<1x16x128xf32, #tpu.memory_space<vmem>>, vector<1x16x128xf32>,
    %cst_32 = arith.constant dense<0.000000e+00> : vector<128xf32>
    %36 = vector.multi_reduction <add>, %32, %cst_32 [0] : vector<16x128xf32> to vector<128xf32>
    %37 = vector.shape_cast %36 : vector<128xf32> to vector<1x128xf32>
    %c0_33 = arith.constant 0 : index
    %c0_34 = arith.constant 0 : index
    %c0_35 = arith.constant 0 : index
    %38 = vector.load %arg6[%c0_33, %c0_34, %c0_35] : memref<1x1x128xf32, #tpu.memory_space<vmem>>, vector<1x1x128xf32>
    %39 = vector.shape_cast %38 : vector<1x1x128xf32> to vector<1x128xf32>
    %40 = vector.shape_cast %37 : vector<1x128xf32> to vector<1x1x128xf32>
    tpu.vector_store %arg6[%c0_33, %c0_34, %c0_35], %40 {strides = array<i32>} : memref<1x1x128xf32, #tpu.memory_space<vmem>>, vector<1x1x128xf32>,
    %41 = arith.mulf %32, %32 : vector<16x128xf32>
    %cst_36 = arith.constant dense<0.000000e+00> : vector<128xf32>
    %42 = vector.multi_reduction <add>, %41, %cst_36 [0] : vector<16x128xf32> to vector<128xf32>
    %43 = vector.shape_cast %42 : vector<128xf32> to vector<1x128xf32>
    %c0_37 = arith.constant 0 : index
    %c0_38 = arith.constant 0 : index
    %c0_39 = arith.constant 0 : index
    %44 = vector.load %arg7[%c0_37, %c0_38, %c0_39] : memref<1x1x128xf32, #tpu.memory_space<vmem>>, vector<1x1x128xf32>
    %45 = vector.shape_cast %44 : vector<1x1x128xf32> to vector<1x128xf32>
    %46 = vector.shape_cast %43 : vector<1x128xf32> to vector<1x1x128xf32>
    tpu.vector_store %arg7[%c0_37, %c0_38, %c0_39], %46 {strides = array<i32>} : memref<1x1x128xf32, #tpu.memory_space<vmem>>, vector<1x1x128xf32>,
    return
  }
  func.func @transform_0(%arg0: i32) -> (i32, i32, i32) {
    %c0_i32 = arith.constant 0 : i32
    %c0_i32_0 = arith.constant 0 : i32
    %c0_i32_1 = arith.constant 0 : i32
    return %arg0, %c0_i32, %c0_i32_0 : i32, i32, i32
  }
  func.func @transform_1(%arg0: i32) -> (i32, i32) {
    %c0_i32 = arith.constant 0 : i32
    %c0_i32_0 = arith.constant 0 : i32
    %c0_i32_1 = arith.constant 0 : i32
    return %c0_i32, %c0_i32_0 : i32, i32
  }
  func.func @transform_2(%arg0: i32) -> (i32, i32) {
    %c0_i32 = arith.constant 0 : i32
    %c0_i32_0 = arith.constant 0 : i32
    %c0_i32_1 = arith.constant 0 : i32
    return %c0_i32, %c0_i32_0 : i32, i32
  }
  func.func @transform_3(%arg0: i32) -> (i32, i32, i32) {
    %c0_i32 = arith.constant 0 : i32
    %c0_i32_0 = arith.constant 0 : i32
    %c0_i32_1 = arith.constant 0 : i32
    %c0_i32_2 = arith.constant 0 : i32
    return %c0_i32, %c0_i32_0, %c0_i32_1 : i32, i32, i32
  }
  func.func @transform_4(%arg0: i32) -> (i32, i32, i32) {
    %c0_i32 = arith.constant 0 : i32
    %c0_i32_0 = arith.constant 0 : i32
    %c0_i32_1 = arith.constant 0 : i32
    return %arg0, %c0_i32, %c0_i32_0 : i32, i32, i32
  }
  func.func @transform_5(%arg0: i32) -> (i32, i32, i32) {
    %c0_i32 = arith.constant 0 : i32
    %c0_i32_0 = arith.constant 0 : i32
    %c0_i32_1 = arith.constant 0 : i32
    return %arg0, %c0_i32, %c0_i32_0 : i32, i32, i32
  }
  func.func @transform_6(%arg0: i32) -> (i32, i32, i32) {
    %c0_i32 = arith.constant 0 : i32
    %c0_i32_0 = arith.constant 0 : i32
    %c0_i32_1 = arith.constant 0 : i32
    return %arg0, %c0_i32, %c0_i32_0 : i32, i32, i32
  }
}

module attributes {stable_mosaic.version = 11 : i64} {
  func.func @_bn_add_relu_kernel(%arg0: i32, %arg1: memref<32x128xf32, #tpu.memory_space<vmem>>, %arg2: memref<32x128xf32, #tpu.memory_space<vmem>>, %arg3: memref<1x128xf32, #tpu.memory_space<vmem>>, %arg4: memref<1x128xf32, #tpu.memory_space<vmem>>, %arg5: memref<32x128xf32, #tpu.memory_space<vmem>>) attributes {dimension_semantics = [#tpu.dimension_semantics<parallel>], iteration_bounds = array<i64: 1>, scalar_prefetch = 0 : i64, scratch_operands = 0 : i64, tpu.core_type = #tpu.core_type<tc>, window_params = [{transform_indices = @transform_0, window_bounds = array<i64: 32, 128>}, {transform_indices = @transform_1, window_bounds = array<i64: 32, 128>}, {pipeline_mode = #tpu.pipeline_mode<synchronous>, transform_indices = @transform_2, window_bounds = array<i64: 1, 128>}, {pipeline_mode = #tpu.pipeline_mode<synchronous>, transform_indices = @transform_3, window_bounds = array<i64: 1, 128>}, {transform_indices = @transform_4, window_bounds = array<i64: 32, 128>}]} {
    %c0 = arith.constant 0 : index
    %c0_0 = arith.constant 0 : index
    %0 = vector.load %arg1[%c0, %c0_0] : memref<32x128xf32, #tpu.memory_space<vmem>>, vector<32x128xf32>
    %c0_1 = arith.constant 0 : index
    %c0_2 = arith.constant 0 : index
    %1 = vector.load %arg3[%c0_1, %c0_2] : memref<1x128xf32, #tpu.memory_space<vmem>>, vector<1x128xf32>
    %2 = vector.broadcast %1 : vector<1x128xf32> to vector<32x128xf32>
    %3 = arith.mulf %0, %2 : vector<32x128xf32>
    %c0_3 = arith.constant 0 : index
    %c0_4 = arith.constant 0 : index
    %4 = vector.load %arg4[%c0_3, %c0_4] : memref<1x128xf32, #tpu.memory_space<vmem>>, vector<1x128xf32>
    %5 = vector.broadcast %4 : vector<1x128xf32> to vector<32x128xf32>
    %6 = arith.addf %3, %5 : vector<32x128xf32>
    %c0_5 = arith.constant 0 : index
    %c0_6 = arith.constant 0 : index
    %7 = vector.load %arg2[%c0_5, %c0_6] : memref<32x128xf32, #tpu.memory_space<vmem>>, vector<32x128xf32>
    %8 = arith.addf %6, %7 : vector<32x128xf32>
    %cst = arith.constant 0.000000e+00 : f32
    %9 = vector.broadcast %cst : f32 to vector<32x128xf32>
    %10 = arith.maximumf %8, %9 : vector<32x128xf32>
    %c0_7 = arith.constant 0 : index
    %c0_8 = arith.constant 0 : index
    %11 = vector.load %arg5[%c0_7, %c0_8] : memref<32x128xf32, #tpu.memory_space<vmem>>, vector<32x128xf32>
    tpu.vector_store %arg5[%c0_7, %c0_8], %10 {strides = array<i32>} : memref<32x128xf32, #tpu.memory_space<vmem>>, vector<32x128xf32>,
    return
  }
  func.func @transform_0(%arg0: i32) -> (i32, i32) {
    %c0_i32 = arith.constant 0 : i32
    %c0_i32_0 = arith.constant 0 : i32
    return %arg0, %c0_i32 : i32, i32
  }
  func.func @transform_1(%arg0: i32) -> (i32, i32) {
    %c0_i32 = arith.constant 0 : i32
    %c0_i32_0 = arith.constant 0 : i32
    return %arg0, %c0_i32 : i32, i32
  }
  func.func @transform_2(%arg0: i32) -> (i32, i32) {
    %c0_i32 = arith.constant 0 : i32
    %c0_i32_0 = arith.constant 0 : i32
    %c0_i32_1 = arith.constant 0 : i32
    return %c0_i32, %c0_i32_0 : i32, i32
  }
  func.func @transform_3(%arg0: i32) -> (i32, i32) {
    %c0_i32 = arith.constant 0 : i32
    %c0_i32_0 = arith.constant 0 : i32
    %c0_i32_1 = arith.constant 0 : i32
    return %c0_i32, %c0_i32_0 : i32, i32
  }
  func.func @transform_4(%arg0: i32) -> (i32, i32) {
    %c0_i32 = arith.constant 0 : i32
    %c0_i32_0 = arith.constant 0 : i32
    return %arg0, %c0_i32 : i32, i32
  }
}

</mosaic_0001>

<bundles_post_ra>
// kernel: basic_block2d_forward.3
= control target key start
LH: loop header
LB: loop body
LE: loop exit
PB: predicated region body
PF: predicated region fallthrough
CT: control target
= control target key end

     0   :  { %s865_s21 = smov 0   ;;  %s969_s0 = inlined_call_operand.vmem [shape: f32[2,16,128], index: 0, kind: input, shape index: {}]   ;;  %s970_s1 = inlined_call_operand.vmem [shape: f32[1,128], index: 1, kind: input, shape index: {}]   ;;  %s971_s2 = inlined_call_operand.vmem [shape: f32[1,128], index: 2, kind: input, shape index: {}]   ;;  %s972_s3 = inlined_call_operand.vmem [shape: bf16[3,128,128], index: 3, kind: input, shape index: {}]   ;;  %s973_s4 = inlined_call_operand.vmem [shape: f32[2,16,128], index: 4, kind: output, shape index: {0}]   ;;  %s974_s5 = inlined_call_operand.vmem [shape: f32[2,1,128], index: 5, kind: output, shape index: {1}]   ;;  %s975_s6 = inlined_call_operand.vmem [shape: f32[2,1,128], index: 6, kind: output, shape index: {2}]  }
   0x1 LB: > { %s647_s1 = sadd.s32 4294967295, %s827_s21   ;;  %p651_p0 = scmp.ge.s32.totalorder %s827_s21, 1  ;;  %s827_s21 = sphi %s865_s21, %s17_s21  }
   0x2   : > { %p217_p1 = scmp.lt.s32.totalorder %s827_s21, 3 }
   0x4   : > { %p218_p2 = pnand %p651_p0, %p217_p1 }
   0x5   : > { %p253_p3 = scmp.lt.s32.totalorder (!%p218_p2), %s647_s1, 1 }
   0x6   : > { %221 = sbr.rel (%p218_p2) target bundleno = 204 (0xcc), region = 36 }
   0xb   : > { %v803_v0 = vld [vmem:[%s972_s3 + $0x78] sm:$0xff]  ;;  %v829_v3 = vmov 0.0   ;;  %v802_v4 = vld [vmem:[%s972_s3 + $0x70] sm:$0xff]  ;;  %s977_s1 = smov (!%p253_p3, %s647_s1), 1  ;;  %v801_v7 = vld [vmem:[%s972_s3 + $0x68] sm:$0xff] }
   0xc   : > { %v795_v1 = vld [vmem:[%s972_s3 + $0x38] sm:$0xff]  ;;  %271 = vst [vmem:[#allocation2] sm:$0x1] %v829_v3  ;;  %362 = vmatpush.bf16.msra.mxu0 %v803_v0  ;;  %v794_v5 = vld [vmem:[%s972_s3 + $0x30] sm:$0xff]  ;;  %s786_s9 = sshll.u32 %s977_s1, 4  ;;  %v793_v8 = vld [vmem:[%s972_s3 + $0x28] sm:$0xff]  ;;  %s265_s30 = scalar_lea.vmem %s974_s5, %s977_s1 }
   0xd   : > { %v811_v2 = vld [vmem:[%s972_s3 + $0xb8] sm:$0xff]  ;;  %424 = vmatpush.bf16.msra.mxu1 %v795_v1  ;;  %272 = vst [vmem:[#allocation2 + $0x11] sm:$0x1] %v829_v3  ;;  %v810_v6 = vld [vmem:[%s972_s3 + $0xb0] sm:$0xff]  ;;  %s257_s12 = scalar_lea.vmem %s969_s0, %s786_s9  ;;  %v809_v9 = vld [vmem:[%s972_s3 + $0xa8] sm:$0xff]  ;;  %s262_s28 = scalar_lea.vmem %s973_s4, %s786_s9 }
   0xe   : > { %506 = vmatpush.bf16.msra.mxu2 %v811_v2  ;;  %v269_v10 = vld [vmem:[%s257_s12] sm:$0xff]  ;;  %v270_v11 = vld [vmem:[%s257_s12 + $0x8] sm:$0xff]  ;;  %v799_v15 = vld [vmem:[%s972_s3 + $0x58] sm:$0xff]  ;;  %s268_s10 = scalar_lea.vmem %s975_s6, %s977_s1 }
   0xf   : > { %273 = vst [vmem:[#allocation2 + $0x1] sm:$0xff] %v269_v10  ;;  %v800_v12 = vld [vmem:[%s972_s3 + $0x60] sm:$0xff]  ;;  %v791_v16 = vld [vmem:[%s972_s3 + $0x18] sm:$0xff]  ;;  %v798_v18 = vld [vmem:[%s972_s3 + $0x50] sm:$0xff]  ;;  %v296_v31 = vpack.c.bf16 %v270_v11, %v269_v10 }
  0x10   : > { %363 = vmatpush.bf16.msra.mxu0 %v802_v4  ;;  %v792_v13 = vld [vmem:[%s972_s3 + $0x20] sm:$0xff]  ;;  %274 = vst [vmem:[#allocation2 + $0x9] sm:$0xff] %v270_v11  ;;  %v807_v17 = vld [vmem:[%s972_s3 + $0x98] sm:$0xff]  ;;  %v790_v19 = vld [vmem:[%s972_s3 + $0x10] sm:$0xff] }
  0x11   : > { %425 = vmatpush.bf16.msra.mxu1 %v794_v5  ;;  %v808_v14 = vld [vmem:[%s972_s3 + $0xa0] sm:$0xff]  ;;  %v806_v20 = vld [vmem:[%s972_s3 + $0x90] sm:$0xff]  ;;  %v797_v21 = vld [vmem:[%s972_s3 + $0x48] sm:$0xff] }
  0x12   : > { %507 = vmatpush.bf16.msra.mxu2 %v810_v6  ;;  %v789_v22 = vld [vmem:[%s972_s3 + $0x8] sm:$0xff]  ;;  %v796_v24 = vld [vmem:[%s972_s3 + $0x40] sm:$0xff] }
  0x13   : > { %v805_v23 = vld [vmem:[%s972_s3 + $0x88] sm:$0xff]  ;;  %v788_v25 = vld [vmem:[%s972_s3] sm:$0xff] }
  0x14   : > { %364 = vmatpush.bf16.msra.mxu0 %v801_v7  ;;  %v804_v28 = vld [vmem:[%s972_s3 + $0x80] sm:$0xff] }
  0x15   : > { %426 = vmatpush.bf16.msra.mxu1 %v793_v8 }
  0x16   : > { %508 = vmatpush.bf16.msra.mxu2 %v809_v9  ;;  %v275_v26 = vld [vmem:[#allocation2] sm:$0xff] }
  0x17   : > { %v276_v27 = vld [vmem:[#allocation2 + $0x8] sm:$0xff] }
  0x18   : > { %365 = vmatpush.bf16.msra.mxu0 %v800_v12  ;;  %v438_v29 = vld [vmem:[#allocation2 + $0x2] sm:$0xff]  ;;  %v439_v30 = vld [vmem:[#allocation2 + $0xa] sm:$0xff]  ;;  %v277_v32 = vpack.c.bf16 %v276_v27, %v275_v26 }
  0x19   : > { %427 = vmatpush.bf16.msra.mxu1 %v792_v13  ;;  %v440_v33 = vpack.c.bf16 %v439_v30, %v438_v29 }
  0x1a   : > { %509 = vmatpush.bf16.msra.mxu2 %v808_v14 }
  0x1c   : > { %366 = vmatpush.bf16.msra.mxu0 %v799_v15 }
  0x1d   : > { %428 = vmatpush.bf16.msra.mxu1 %v791_v16 }
  0x1e   : > { %510 = vmatpush.bf16.msra.mxu2 %v807_v17 }
  0x20   : > { %367 = vmatpush.bf16.msra.mxu0 %v798_v18 }
  0x21   : > { %429 = vmatpush.bf16.msra.mxu1 %v790_v19 }
  0x22   : > { %511 = vmatpush.bf16.msra.mxu2 %v806_v20 }
  0x24   : > { %368 = vmatpush.bf16.msra.mxu0 %v797_v21 }
  0x25   : > { %430 = vmatpush.bf16.msra.mxu1 %v789_v22 }
  0x26   : > { %512 = vmatpush.bf16.msra.mxu2 %v805_v23 }
  0x28   : > { %369 = vmatpush.bf16.msra.mxu0 %v796_v24 }
  0x29   : > { %431 = vmatpush.bf16.msra.mxu1 %v788_v25 }
  0x2a   : > { %513 = vmatpush.bf16.msra.mxu2 %v804_v28 }
  0x2b   : > { %370 = vmatmul.bf16.vlgmr.msra.gmra.mxu0 %v296_v31 }
  0x2c   : > { %432 = vmatmul.bf16.vlgmr.msra.gmra.mxu1 %v277_v32 }
  0x2d   : > { %514 = vmatmul.bf16.vlgmr.msra.gmra.mxu2 %v440_v33 }
  0xa8   : > { %v371_v34 = vpop.f32.mrf.mxu0 }
  0xa9   : > { %v433_v35 = vpop.f32.mrf.mxu1 }
  0xaa   : > { %v434_v36 = vadd.f32 %v433_v35, %v371_v34 }
  0xb0   : > { %v515_v37 = vpop.f32.mrf.mxu2  ;;  %v373_v39 = vpop.f32.mrf.mxu0 }
  0xb1   : > { %v520_v38 = vadd.f32 %v515_v37, %v434_v36  ;;  %v435_v40 = vpop.f32.mrf.mxu1 }
  0xb2   : > { %v436_v41 = vadd.f32 %v435_v40, %v373_v39 }
  0xb3   : > { %522 = vst [vmem:[%s262_s28] sm:$0xff] %v520_v38  ;;  %v532_v44 = vmul.f32 %v520_v38, %v520_v38 }
  0xb8   : > { %v517_v42 = vpop.f32.mrf.mxu2 }
  0xb9   : > { %v521_v43 = vadd.f32 %v517_v42, %v436_v41 }
  0xbb   : > { %523 = vst [vmem:[%s262_s28 + $0x8] sm:$0xff] %v521_v43  ;;  %v524_v45 = vadd.f32 %v521_v43, %v520_v38  ;;  %v533_v46 = vmul.f32 %v521_v43, %v521_v43 }
  0xbd   : > { %v525_v47 = vrot.slane %v524_v45, 4  ;;  %v534_v48 = vadd.f32 %v533_v46, %v532_v44 }
  0xbf   : > { %v526_v49 = vadd.f32 %v525_v47, %v524_v45  ;;  %v535_v50 = vrot.slane %v534_v48, 4 }
  0xc1   : > { %v527_v51 = vrot.slane %v526_v49, 2  ;;  %v536_v52 = vadd.f32 %v535_v50, %v534_v48 }
  0xc3   : > { %v528_v53 = vadd.f32 %v527_v51, %v526_v49  ;;  %v537_v54 = vrot.slane %v536_v52, 2 }
  0xc5   : > { %v529_v55 = vrot.slane %v528_v53, 1  ;;  %v538_v56 = vadd.f32 %v537_v54, %v536_v52 }
  0xc7   : > { %v530_v57 = vadd.f32 %v529_v55, %v528_v53  ;;  %v539_v58 = vrot.slane %v538_v56, 1 }
  0xc9   : > { %531 = vst [vmem:[%s265_s30] sm:$0x1] %v530_v57  ;;  %v540_v59 = vadd.f32 %v539_v58, %v538_v56 }
  0xcb   : > { %541 = vst [vmem:[%s268_s10] sm:$0x1] %v540_v59 }
  0xcc PF: > { %s17_s21 = sadd.s32 1, %s827_s21  }
  0xcd   : > { %p14_p4 = scmp.ge.s32.totalorder %s17_s21, 4  }
  0xcf   :  { %16 = sbr.rel (!%p14_p4) target bundleno = 1 (0x1), region = 92 }

// kernel: tile.23
= control target key start
LH: loop header
LB: loop body
LE: loop exit
PB: predicated region body
PF: predicated region fallthrough
CT: control target
= control target key end

     0   :  { %s28_s0 = inlined_call_operand.vmem [shape: f32[8], index: 0, kind: input, shape index: {}]   ;;  %s29_s1 = inlined_call_operand.vmem [shape: f32[16,8], index: 1, kind: output, shape index: {}]  }
   0x1   :  { %v4_v0 = vld [vmem:[%s28_s0] ss:$0 sm:$0xff] }
   0x2   :  { %5 = vst [vmem:[%s29_s1] sm:$0xff] %v4_v0 }
   0x3   :  { %8 = vst [vmem:[%s29_s1 + $0x8] sm:$0xff] %v4_v0 }

// kernel: tile.24
= control target key start
LH: loop header
LB: loop body
LE: loop exit
PB: predicated region body
PF: predicated region fallthrough
CT: control target
= control target key end

     0   :  { %s131_s10 = smov 120   ;;  %s132_s11 = smov 104   ;;  %vm3_vm0 = vcmask 64512   ;;  %vm9_vm1 = vcmask 1048512   ;;  %vm15_vm2 = vcmask 982912   ;;  %vm21_vm3 = vcmask 917312   ;;  %s207_s0 = inlined_call_operand.vmem [shape: f32[16,8], index: 0, kind: input, shape index: {}]   ;;  %s208_s1 = inlined_call_operand.vmem [shape: f32[1,128], index: 1, kind: output, shape index: {}]  }
   0x1   :  { %v101_v0 = vld [vmem:[%s207_s0 + $0xf] sm:$0x1]   ;;  %v103_v1 = vld [vmem:[%s207_s0 + $0xd] sm:$0x1]   ;;  %v105_v2 = vld [vmem:[%s207_s0 + $0xb] sm:$0x1]  }
   0x2   :  { %7 = vrot.lane.b32.xlu0 %v101_v0, %s131_s10  ;;  %19 = vrot.lane.b32.xlu1 %v103_v1, %s132_s11  ;;  %s133_s14 = smov 88   ;;  %v102_v3 = vld [vmem:[%s207_s0 + $0xe] sm:$0x1]   ;;  %v104_v4 = vld [vmem:[%s207_s0 + $0xc] sm:$0x1]   ;;  %s134_s19 = smov 112  }
   0x3   :  { %31 = vrot.lane.b32.xlu2 %v105_v2, %s133_s14  ;;  %s135_s20 = smov 96   ;;  %v106_v5 = vld [vmem:[%s207_s0 + $0xa] sm:$0x1]   ;;  %s136_s23 = smov 80   ;;  %v107_v6 = vld [vmem:[%s207_s0 + $0x9] sm:$0x1]  }
   0x4   :  { %v108_v7 = vld [vmem:[%s207_s0 + $0x8] sm:$0x1]   ;;  %s137_s28 = smov 72   ;;  %s138_s29 = smov 64   ;;  %v109_v8 = vld [vmem:[%s207_s0 + $0x7] sm:$0x1]  }
   0x5   :  { %s139_s3 = smov 56   ;;  %v110_v9 = vld [vmem:[%s207_s0 + $0x6] sm:$0x1]   ;;  %v111_v10 = vld [vmem:[%s207_s0 + $0x5] sm:$0x1]   ;;  %s140_s8 = smov 48  }
   0x6   :  { %s141_s9 = smov 40   ;;  %v112_v11 = vld [vmem:[%s207_s0 + $0x4] sm:$0x1]   ;;  %s142_s12 = smov 32   ;;  %v113_v12 = vld [vmem:[%s207_s0 + $0x3] sm:$0x1]  }
   0x7   :  { %v114_v13 = vld [vmem:[%s207_s0 + $0x2] sm:$0x1]   ;;  %s143_s17 = smov 24   ;;  %s144_s18 = smov 16   ;;  %v115_v14 = vld [vmem:[%s207_s0 + $0x1] sm:$0x1]  }
   0x8   :  { %s145_s21 = smov 8   ;;  %v2_v15 = vld [vmem:[%s207_s0] sm:$0x1]   ;;  %vm27_vm4 = vcmask 851712   ;;  %vm33_vm5 = vcmask 786112   ;;  %vm39_vm6 = vcmask 720512  }
   0x9   :  { %4 = vst.msk [vmem:[#allocation0] sm:$0x1] %vm3_vm0, %v2_v15   ;;  %vm45_vm7 = vcmask 654912   ;;  %vm51_vm8 = vcmask 589312   ;;  %vm57_vm9 = vcmask 523712   ;;  %vm63_vm10 = vcmask 458112  }
   0xa   :  { %13 = vrot.lane.b32.xlu0 %v102_v3, %s134_s19  ;;  %25 = vrot.lane.b32.xlu1 %v104_v4, %s135_s20  ;;  %vm69_vm11 = vcmask 392512   ;;  %vm75_vm12 = vcmask 326912   ;;  %vm81_vm13 = vcmask 261312   ;;  %vm87_vm14 = vcmask 195712  }
   0xb   :  { %37 = vrot.lane.b32.xlu2 %v106_v5, %s136_s23  ;;  %vm93_vm15 = vcmask 130112  }
  0x12   :  { %43 = vrot.lane.b32.xlu0 %v107_v6, %s137_s28  ;;  %49 = vrot.lane.b32.xlu1 %v108_v7, %s138_s29 }
  0x13   :  { %55 = vrot.lane.b32.xlu2 %v109_v8, %s139_s3 }
  0x1a   :  { %61 = vrot.lane.b32.xlu0 %v110_v9, %s140_s8  ;;  %67 = vrot.lane.b32.xlu1 %v111_v10, %s141_s9 }
  0x1b   :  { %73 = vrot.lane.b32.xlu2 %v112_v11, %s142_s12 }
  0x22   :  { %79 = vrot.lane.b32.xlu0 %v113_v12, %s143_s17  ;;  %85 = vrot.lane.b32.xlu1 %v114_v13, %s144_s18 }
  0x23   :  { %91 = vrot.lane.b32.xlu2 %v115_v14, %s145_s21 }
  0x5d   :  { %v32_v16 = vpop.permute.xlu2 %31  }
  0x65   :  { %v38_v17 = vpop.permute.xlu2 %37  }
  0x6d   :  { %v56_v18 = vpop.permute.xlu2 %55  }
  0x74   :  { %v8_v19 = vpop.permute.xlu0 %7   ;;  %v20_v20 = vpop.permute.xlu1 %19  }
  0x75   :  { %10 = vst.msk [vmem:[#allocation0] sm:$0x1] %vm9_vm1, %v8_v19   ;;  %v74_v21 = vpop.permute.xlu2 %73  }
  0x7c   :  { %v14_v22 = vpop.permute.xlu0 %13   ;;  %v26_v23 = vpop.permute.xlu1 %25  }
  0x7d   :  { %16 = vst.msk [vmem:[#allocation0] sm:$0x1] %vm15_vm2, %v14_v22   ;;  %v92_v24 = vpop.permute.xlu2 %91  }
  0x7e   :  { %22 = vst.msk [vmem:[#allocation0] sm:$0x1] %vm21_vm3, %v20_v20  }
  0x7f   :  { %28 = vst.msk [vmem:[#allocation0] sm:$0x1] %vm27_vm4, %v26_v23  }
  0x80   :  { %34 = vst.msk [vmem:[#allocation0] sm:$0x1] %vm33_vm5, %v32_v16  }
  0x81   :  { %40 = vst.msk [vmem:[#allocation0] sm:$0x1] %vm39_vm6, %v38_v17  }
  0x84   :  { %v44_v25 = vpop.permute.xlu0 %43   ;;  %v50_v26 = vpop.permute.xlu1 %49  }
  0x85   :  { %46 = vst.msk [vmem:[#allocation0] sm:$0x1] %vm45_vm7, %v44_v25  }
  0x86   :  { %52 = vst.msk [vmem:[#allocation0] sm:$0x1] %vm51_vm8, %v50_v26  }
  0x87   :  { %58 = vst.msk [vmem:[#allocation0] sm:$0x1] %vm57_vm9, %v56_v18  }
  0x8c   :  { %v62_v27 = vpop.permute.xlu0 %61   ;;  %v68_v28 = vpop.permute.xlu1 %67  }
  0x8d   :  { %64 = vst.msk [vmem:[#allocation0] sm:$0x1] %vm63_vm10, %v62_v27  }
  0x8e   :  { %70 = vst.msk [vmem:[#allocation0] sm:$0x1] %vm69_vm11, %v68_v28  }
  0x8f   :  { %76 = vst.msk [vmem:[#allocation0] sm:$0x1] %vm75_vm12, %v74_v21  }
  0x94   :  { %v80_v29 = vpop.permute.xlu0 %79   ;;  %v86_v30 = vpop.permute.xlu1 %85  }
  0x95   :  { %82 = vst.msk [vmem:[#allocation0] sm:$0x1] %vm81_vm13, %v80_v29  }
  0x96   :  { %88 = vst.msk [vmem:[#allocation0] sm:$0x1] %vm87_vm14, %v86_v30  }
  0x97   :  { %94 = vst.msk [vmem:[#allocation0] sm:$0x1] %vm93_vm15, %v92_v24  }
  0x9e   :  { %v97_v31 = vld [vmem:[#allocation0] sm:$0x1] }
  0x9f   :  { %100 = vst [vmem:[%s208_s1] sm:$0x1] %v97_v31 }

// kernel: basic_block2d_forward.4
= control target key start
LH: loop header
LB: loop body
LE: loop exit
PB: predicated region body
PF: predicated region fallthrough
CT: control target
= control target key end

     0   :  { %s881_s21 = smov 0   ;;  %s991_s0 = inlined_call_operand.vmem [shape: f32[2,16,128], index: 0, kind: input, shape index: {}]   ;;  %s992_s1 = inlined_call_operand.vmem [shape: f32[1,128], index: 1, kind: input, shape index: {}]   ;;  %s993_s2 = inlined_call_operand.vmem [shape: f32[1,128], index: 2, kind: input, shape index: {}]   ;;  %s994_s3 = inlined_call_operand.vmem [shape: bf16[3,128,128], index: 3, kind: input, shape index: {}]   ;;  %s995_s4 = inlined_call_operand.vmem [shape: f32[2,16,128], index: 4, kind: output, shape index: {0}]   ;;  %s996_s5 = inlined_call_operand.vmem [shape: f32[2,1,128], index: 5, kind: output, shape index: {1}]   ;;  %s997_s6 = inlined_call_operand.vmem [shape: f32[2,1,128], index: 6, kind: output, shape index: {2}]  }
   0x1 LB: > { %s661_s22 = sadd.s32 4294967295, %s843_s21   ;;  %p665_p0 = scmp.ge.s32.totalorder %s843_s21, 1  ;;  %s843_s21 = sphi %s881_s21, %s17_s21  }
   0x2   : > { %p217_p1 = scmp.lt.s32.totalorder %s843_s21, 3 }
   0x4   : > { %p218_p2 = pnand %p665_p0, %p217_p1 }
   0x5   : > { %p253_p3 = scmp.lt.s32.totalorder (!%p218_p2), %s661_s22, 1 }
   0x6   : > { %221 = sbr.rel (%p218_p2) target bundleno = 204 (0xcc), region = 36 }
   0xb   : > { %v817_v0 = vld [vmem:[%s994_s3 + $0x78] sm:$0xff]  ;;  %v845_v3 = vmov 0.0   ;;  %v816_v4 = vld [vmem:[%s994_s3 + $0x70] sm:$0xff]  ;;  %s999_s22 = smov (!%p253_p3, %s661_s22), 1  ;;  %v815_v7 = vld [vmem:[%s994_s3 + $0x68] sm:$0xff] }
   0xc   : > { %v809_v1 = vld [vmem:[%s994_s3 + $0x38] sm:$0xff]  ;;  %285 = vst [vmem:[#allocation2] sm:$0x1] %v845_v3  ;;  %376 = vmatpush.bf16.msra.mxu0 %v817_v0  ;;  %v808_v5 = vld [vmem:[%s994_s3 + $0x30] sm:$0xff]  ;;  %s800_s11 = sshll.u32 %s999_s22, 4  ;;  %v807_v8 = vld [vmem:[%s994_s3 + $0x28] sm:$0xff]  ;;  %s265_s17 = scalar_lea.vmem %s996_s5, %s999_s22 }
   0xd   : > { %v825_v2 = vld [vmem:[%s994_s3 + $0xb8] sm:$0xff]  ;;  %438 = vmatpush.bf16.msra.mxu1 %v809_v1  ;;  %286 = vst [vmem:[#allocation2 + $0x11] sm:$0x1] %v845_v3  ;;  %v824_v6 = vld [vmem:[%s994_s3 + $0xb0] sm:$0xff]  ;;  %s257_s14 = scalar_lea.vmem %s991_s0, %s800_s11  ;;  %v823_v9 = vld [vmem:[%s994_s3 + $0xa8] sm:$0xff]  ;;  %s262_s15 = scalar_lea.vmem %s995_s4, %s800_s11 }
   0xe   : > { %520 = vmatpush.bf16.msra.mxu2 %v825_v2  ;;  %v269_v10 = vld [vmem:[%s257_s14] sm:$0xff]  ;;  %v270_v11 = vld [vmem:[%s257_s14 + $0x8] sm:$0xff]  ;;  %v813_v21 = vld [vmem:[%s994_s3 + $0x58] sm:$0xff]  ;;  %s268_s20 = scalar_lea.vmem %s997_s6, %s999_s22 }
   0xf   : > { %v835_v12 = vld [vmem:[%s992_s1] ss:$0 sm:$0xff]  ;;  %v805_v22 = vld [vmem:[%s994_s3 + $0x18] sm:$0xff]  ;;  %v812_v26 = vld [vmem:[%s994_s3 + $0x50] sm:$0xff] }
  0x10   : > { %377 = vmatpush.bf16.msra.mxu0 %v816_v4  ;;  %v836_v13 = vld [vmem:[%s993_s2] ss:$0 sm:$0xff]  ;;  %v275_v17 = vmul.f32 %v835_v12, %v269_v10  ;;  %v276_v18 = vmul.f32 %v835_v12, %v270_v11  ;;  %v821_v23 = vld [vmem:[%s994_s3 + $0x98] sm:$0xff]  ;;  %v804_v27 = vld [vmem:[%s994_s3 + $0x10] sm:$0xff] }
  0x11   : > { %439 = vmatpush.bf16.msra.mxu1 %v808_v5  ;;  %v814_v14 = vld [vmem:[%s994_s3 + $0x60] sm:$0xff]  ;;  %v820_v28 = vld [vmem:[%s994_s3 + $0x90] sm:$0xff]  ;;  %v811_v29 = vld [vmem:[%s994_s3 + $0x48] sm:$0xff] }
  0x12   : > { %521 = vmatpush.bf16.msra.mxu2 %v824_v6  ;;  %v806_v15 = vld [vmem:[%s994_s3 + $0x20] sm:$0xff]  ;;  %v281_v19 = vadd.f32 %v836_v13, %v275_v17  ;;  %v282_v20 = vadd.f32 %v836_v13, %v276_v18  ;;  %v803_v30 = vld [vmem:[%s994_s3 + $0x8] sm:$0xff] }
  0x13   : > { %v822_v16 = vld [vmem:[%s994_s3 + $0xa0] sm:$0xff]  ;;  %v819_v31 = vld [vmem:[%s994_s3 + $0x88] sm:$0xff] }
  0x14   : > { %378 = vmatpush.bf16.msra.mxu0 %v815_v7  ;;  %v283_v24 = vmax.f32 %v281_v19, 0.0  ;;  %v284_v25 = vmax.f32 %v282_v20, 0.0  ;;  %v810_v32 = vld [vmem:[%s994_s3 + $0x40] sm:$0xff] }
  0x15   : > { %440 = vmatpush.bf16.msra.mxu1 %v807_v8  ;;  %v802_v33 = vld [vmem:[%s994_s3] sm:$0xff] }
  0x16   : > { %522 = vmatpush.bf16.msra.mxu2 %v823_v9  ;;  %287 = vst [vmem:[#allocation2 + $0x1] sm:$0xff] %v283_v24  ;;  %v818_v36 = vld [vmem:[%s994_s3 + $0x80] sm:$0xff]  ;;  %v310_v39 = vpack.c.bf16 %v284_v25, %v283_v24 }
  0x17   : > { %288 = vst [vmem:[#allocation2 + $0x9] sm:$0xff] %v284_v25 }
  0x18   : > { %379 = vmatpush.bf16.msra.mxu0 %v814_v14 }
  0x19   : > { %441 = vmatpush.bf16.msra.mxu1 %v806_v15 }
  0x1a   : > { %523 = vmatpush.bf16.msra.mxu2 %v822_v16 }
  0x1c   : > { %380 = vmatpush.bf16.msra.mxu0 %v813_v21 }
  0x1d   : > { %442 = vmatpush.bf16.msra.mxu1 %v805_v22  ;;  %v289_v34 = vld [vmem:[#allocation2] sm:$0xff] }
  0x1e   : > { %524 = vmatpush.bf16.msra.mxu2 %v821_v23  ;;  %v290_v35 = vld [vmem:[#allocation2 + $0x8] sm:$0xff] }
  0x1f   : > { %v452_v37 = vld [vmem:[#allocation2 + $0x2] sm:$0xff]  ;;  %v453_v38 = vld [vmem:[#allocation2 + $0xa] sm:$0xff]  ;;  %v291_v40 = vpack.c.bf16 %v290_v35, %v289_v34 }
  0x20   : > { %381 = vmatpush.bf16.msra.mxu0 %v812_v26  ;;  %v454_v41 = vpack.c.bf16 %v453_v38, %v452_v37 }
  0x21   : > { %443 = vmatpush.bf16.msra.mxu1 %v804_v27 }
  0x22   : > { %525 = vmatpush.bf16.msra.mxu2 %v820_v28 }
  0x24   : > { %382 = vmatpush.bf16.msra.mxu0 %v811_v29 }
  0x25   : > { %444 = vmatpush.bf16.msra.mxu1 %v803_v30 }
  0x26   : > { %526 = vmatpush.bf16.msra.mxu2 %v819_v31 }
  0x28   : > { %383 = vmatpush.bf16.msra.mxu0 %v810_v32 }
  0x29   : > { %445 = vmatpush.bf16.msra.mxu1 %v802_v33 }
  0x2a   : > { %527 = vmatpush.bf16.msra.mxu2 %v818_v36 }
  0x2b   : > { %384 = vmatmul.bf16.vlgmr.msra.gmra.mxu0 %v310_v39 }
  0x2c   : > { %446 = vmatmul.bf16.vlgmr.msra.gmra.mxu1 %v291_v40 }
  0x2d   : > { %528 = vmatmul.bf16.vlgmr.msra.gmra.mxu2 %v454_v41 }
  0xa8   : > { %v385_v42 = vpop.f32.mrf.mxu0 }
  0xa9   : > { %v447_v43 = vpop.f32.mrf.mxu1 }
  0xaa   : > { %v448_v44 = vadd.f32 %v447_v43, %v385_v42 }
  0xb0   : > { %v529_v45 = vpop.f32.mrf.mxu2  ;;  %v387_v47 = vpop.f32.mrf.mxu0 }
  0xb1   : > { %v534_v46 = vadd.f32 %v529_v45, %v448_v44  ;;  %v449_v48 = vpop.f32.mrf.mxu1 }
  0xb2   : > { %v450_v49 = vadd.f32 %v449_v48, %v387_v47 }
  0xb3   : > { %536 = vst [vmem:[%s262_s15] sm:$0xff] %v534_v46  ;;  %v546_v52 = vmul.f32 %v534_v46, %v534_v46 }
  0xb8   : > { %v531_v50 = vpop.f32.mrf.mxu2 }
  0xb9   : > { %v535_v51 = vadd.f32 %v531_v50, %v450_v49 }
  0xbb   : > { %537 = vst [vmem:[%s262_s15 + $0x8] sm:$0xff] %v535_v51  ;;  %v538_v53 = vadd.f32 %v535_v51, %v534_v46  ;;  %v547_v54 = vmul.f32 %v535_v51, %v535_v51 }
  0xbd   : > { %v539_v55 = vrot.slane %v538_v53, 4  ;;  %v548_v56 = vadd.f32 %v547_v54, %v546_v52 }
  0xbf   : > { %v540_v57 = vadd.f32 %v539_v55, %v538_v53  ;;  %v549_v58 = vrot.slane %v548_v56, 4 }
  0xc1   : > { %v541_v59 = vrot.slane %v540_v57, 2  ;;  %v550_v60 = vadd.f32 %v549_v58, %v548_v56 }
  0xc3   : > { %v542_v61 = vadd.f32 %v541_v59, %v540_v57  ;;  %v551_v62 = vrot.slane %v550_v60, 2 }
  0xc5   : > { %v543_v63 = vrot.slane %v542_v61, 1  ;;  %v552_v0 = vadd.f32 %v551_v62, %v550_v60 }
  0xc7   : > { %v544_v1 = vadd.f32 %v543_v63, %v542_v61  ;;  %v553_v2 = vrot.slane %v552_v0, 1 }
  0xc9   : > { %545 = vst [vmem:[%s265_s17] sm:$0x1] %v544_v1  ;;  %v554_v3 = vadd.f32 %v553_v2, %v552_v0 }
  0xcb   : > { %555 = vst [vmem:[%s268_s20] sm:$0x1] %v554_v3 }
  0xcc PF: > { %s17_s21 = sadd.s32 1, %s843_s21  }
  0xcd   : > { %p14_p4 = scmp.ge.s32.totalorder %s17_s21, 4  }
  0xcf   :  { %16 = sbr.rel (!%p14_p4) target bundleno = 1 (0x1), region = 92 }

// kernel: basic_block2d_forward.5
= control target key start
LH: loop header
LB: loop body
LE: loop exit
PB: predicated region body
PF: predicated region fallthrough
CT: control target
= control target key end

     0   :  { %s126_s0 = inlined_call_operand.vmem [shape: f32[32,128], index: 0, kind: input, shape index: {}]   ;;  %s127_s2 = inlined_call_operand.vmem [shape: f32[1,128], index: 2, kind: input, shape index: {}]   ;;  %s128_s3 = inlined_call_operand.vmem [shape: f32[1,128], index: 3, kind: input, shape index: {}]   ;;  %s129_s1 = inlined_call_operand.vmem [shape: f32[32,128], index: 1, kind: input, shape index: {}]   ;;  %s130_s4 = inlined_call_operand.vmem [shape: f32[32,128], index: 4, kind: output, shape index: {}]  }
   0x1   :  { %v17_v0 = vld [vmem:[%s126_s0] sm:$0xff]  ;;  %v18_v4 = vld [vmem:[%s126_s0 + $0x8] sm:$0xff]  ;;  %v19_v5 = vld [vmem:[%s126_s0 + $0x10] sm:$0xff] }
   0x2   :  { %v57_v1 = vld [vmem:[%s127_s2] ss:$0 sm:$0xff]  ;;  %v20_v9 = vld [vmem:[%s126_s0 + $0x18] sm:$0xff]  ;;  %v38_v11 = vld [vmem:[%s129_s1 + $0x8] sm:$0xff] }
   0x3   :  { %v58_v2 = vld [vmem:[%s128_s3] ss:$0 sm:$0xff]  ;;  %v25_v3 = vmul.f32 %v57_v1, %v17_v0  ;;  %v26_v7 = vmul.f32 %v57_v1, %v18_v4  ;;  %v27_v8 = vmul.f32 %v57_v1, %v19_v5  ;;  %v39_v12 = vld [vmem:[%s129_s1 + $0x10] sm:$0xff]  ;;  %v28_v13 = vmul.f32 %v57_v1, %v20_v9  ;;  %v40_v16 = vld [vmem:[%s129_s1 + $0x18] sm:$0xff] }
   0x4   :  { %v37_v6 = vld [vmem:[%s129_s1] sm:$0xff] }
   0x5   :  { %v33_v10 = vadd.f32 %v58_v2, %v25_v3  ;;  %v34_v14 = vadd.f32 %v58_v2, %v26_v7  ;;  %v35_v15 = vadd.f32 %v58_v2, %v27_v8  ;;  %v36_v18 = vadd.f32 %v58_v2, %v28_v13 }
   0x7   :  { %v41_v17 = vadd.f32 %v37_v6, %v33_v10  ;;  %v42_v19 = vadd.f32 %v38_v11, %v34_v14  ;;  %v43_v20 = vadd.f32 %v39_v12, %v35_v15  ;;  %v44_v22 = vadd.f32 %v40_v16, %v36_v18 }
   0x9   :  { %v45_v21 = vmax.f32 %v41_v17, 0.0  ;;  %v46_v23 = vmax.f32 %v42_v19, 0.0  ;;  %v47_v24 = vmax.f32 %v43_v20, 0.0  ;;  %v48_v25 = vmax.f32 %v44_v22, 0.0 }
   0xb   :  { %49 = vst [vmem:[%s130_s4] sm:$0xff] %v45_v21 }
   0xc   :  { %50 = vst [vmem:[%s130_s4 + $0x8] sm:$0xff] %v46_v23 }
   0xd   :  { %51 = vst [vmem:[%s130_s4 + $0x10] sm:$0xff] %v47_v24 }
   0xe   :  { %52 = vst [vmem:[%s130_s4 + $0x18] sm:$0xff] %v48_v25 }

</bundles_post_ra>
